<compile_context>
chip_gen: v7x
topology: tpu7x:2x2x1
jax: 0.10.0
libtpu: 0.0.40
codegen_flags: <defaults>
</compile_context>

<pallas_src>
import jax
import jax.numpy as jnp
from jax.experimental import pallas as pl
from jax.experimental.pallas import tpu as pltpu

INPUT_DIM = 5
HIDDEN_DIMS = (64, 32, 16)
BN_EPS = 1e-5
DEFAULT_BLOCK_BATCH = 16384   # lane-dense batch tile (multiple of 128)


def _round_up(x, m):
    return ((x + m - 1) // m) * m


# --------------------------------------------------------------------------
# Kernel
# --------------------------------------------------------------------------
def _mlp_kernel(
    x_ref,                       # (5,  TB)  bf16 feature-major input tile
    w1_ref, b1_ref,              # (64, 5)  bf16, (64, 1) f32   BN-folded
    w2_ref, b2_ref,              # (32, 64) bf16, (32, 1) f32   BN-folded
    w3_ref, b3_ref,              # (16, 32) bf16, (16, 1) f32   BN-folded
    wout_ref,                    # (16, 1)  f32  output weights (column)
    wsx_ref,                     # (5, 1)   f32  Wout @ Wskip folded (column)
    c_ref,                       # (1, 1)   f32  Wout @ bskip + bout
    out_ref,                     # (1, TB)  f32  lane-dense output tile
):
    x = x_ref[...]                                                     # (5, TB) bf16

    # Hidden layer 1: Linear(5 -> 64) [BN folded] + ReLU
    h = jnp.dot(w1_ref[...], x, preferred_element_type=jnp.float32) + b1_ref[...]
    h = jnp.maximum(h, 0.0)

    # Hidden layer 2: Linear(64 -> 32) [BN folded] + ReLU
    h = jnp.dot(w2_ref[...], h.astype(jnp.bfloat16),
                preferred_element_type=jnp.float32) + b2_ref[...]
    h = jnp.maximum(h, 0.0)

    # Hidden layer 3: Linear(32 -> 16) [BN folded] + ReLU
    h = jnp.dot(w3_ref[...], h.astype(jnp.bfloat16),
                preferred_element_type=jnp.float32) + b3_ref[...]
    h = jnp.maximum(h, 0.0)

    # Output layer + folded skip path (f32 VPU multiply + sublane reduce):
    #   out = wout . h3  +  (Wout@Wskip) . x  +  c
    out = jnp.sum(h * wout_ref[...], axis=0, keepdims=True)             # (1, TB)
    out = out + jnp.sum(x.astype(jnp.float32) * wsx_ref[...],
                        axis=0, keepdims=True)                          # (1, TB)
    out_ref[...] = (out + c_ref[...]).astype(out_ref.dtype)


# --------------------------------------------------------------------------
# Wrappers
# --------------------------------------------------------------------------
def nicu_readiness_forward_fm(x_fm, folded, *, block_batch=DEFAULT_BLOCK_BATCH):
    """Feature-major forward: x_fm (INPUT_DIM, batch) -> (1, batch) f32 logits.

    Preferred entry point: no transpose / pad pass over the input is created.
    """
    batch = x_fm.shape[1]

    # Lane-dense batch tile: multiple of 128, capped for VMEM robustness
    # (comfortably < 32 MiB scoped VMEM incl. v7x), and additionally capped
    # at ~half the batch so the "parallel" grid axis has >=2 steps (v7x TCs).
    block_batch = max(128, _round_up(int(block_batch), 128))
    half = _round_up(int(pl.cdiv(batch, 2)), 128)
    tb = max(128, min(block_batch, half))
    nb = int(pl.cdiv(batch, tb))           # Pallas masks the overhanging tail

    x_bf16 = x_fm.astype(jnp.bfloat16)     # halve input HBM bytes; MXU-native

    inputs = (
        x_bf16,
        folded["w1"], folded["b1"],
        folded["w2"], folded["b2"],
        folded["w3"], folded["b3"],
        folded["wout"], folded["wsx"], folded["c"],
    )

    def resident_spec(a):
        # Full-array block, constant index map -> stays VMEM-resident across
        # all batch grid steps (no re-DMA of weights).
        n = a.ndim
        return pl.BlockSpec(a.shape, lambda i: (0,) * n)

    in_specs = [pl.BlockSpec((INPUT_DIM, tb), lambda i: (0, i))]
    in_specs += [resident_spec(a) for a in inputs[1:]]

    # Advisory cost for XLA's scheduler around the custom call.
    flops = 2 * batch * (INPUT_DIM * HIDDEN_DIMS[0]
                         + HIDDEN_DIMS[0] * HIDDEN_DIMS[1]
                         + HIDDEN_DIMS[1] * HIDDEN_DIMS[2]
                         + HIDDEN_DIMS[2] + INPUT_DIM)
    weight_bytes = sum(int(a.size) * a.dtype.itemsize for a in inputs[1:])
    bytes_accessed = batch * (INPUT_DIM * 2 + 4) + weight_bytes
    cost = pl.CostEstimate(flops=flops, transcendentals=0,
                           bytes_accessed=bytes_accessed)

    out = pl.pallas_call(
        _mlp_kernel,
        out_shape=jax.ShapeDtypeStruct((1, batch), jnp.float32),
        grid=(nb,),
        in_specs=in_specs,
        out_specs=pl.BlockSpec((1, tb), lambda i: (0, i)),
        compiler_params=pltpu.CompilerParams(
            dimension_semantics=("parallel",),
        ),
        cost_estimate=cost,
    )(*inputs)

    return out                              # (1, batch)


def nicu_readiness_forward(x, folded, *, block_batch=DEFAULT_BLOCK_BATCH):
    """Batch-major forward (PyTorch convention): x (batch, INPUT_DIM) -> (batch, 1)."""
    out_fm = nicu_readiness_forward_fm(x.T, folded, block_batch=block_batch)
    return out_fm.T                         # (batch, 1)


# --------------------------------------------------------------------------
# Parameters (PyTorch layout) + host-side folding
# --------------------------------------------------------------------------
def init_params(key):
    """Xavier-normal weights (out, in), zero biases, BN gamma=1/beta=0 and
    non-trivial running stats (so the BN fold is actually exercised)."""
    dims = (INPUT_DIM,) + HIDDEN_DIMS

    def xavier(k, fan_out, fan_in):
        std = (2.0 / (fan_in + fan_out)) ** 0.5
        return std * jax.random.normal(k, (fan_out, fan_in), dtype=jnp.float32)

    keys = jax.random.split(key, 8)
    p = {}
    for i, (din, dout) in enumerate(zip(dims[:-1], dims[1:]), start=1):
        p[f"w{i}"] = xavier(keys[i - 1], dout, din)
        p[f"b{i}"] = jnp.zeros((dout,), jnp.float32)
        p[f"gamma{i}"] = jnp.ones((dout,), jnp.float32)
        p[f"beta{i}"] = jnp.zeros((dout,), jnp.float32)
        p[f"mean{i}"] = 0.05 * jax.random.normal(keys[2 + i], (dout,), jnp.float32)
        p[f"var{i}"] = 1.0 + 0.1 * jax.random.uniform(keys[2 + i], (dout,), jnp.float32)
    p["wskip"] = xavier(keys[6], HIDDEN_DIMS[-1], INPUT_DIM)   # (16, 5)
    p["bskip"] = jnp.zeros((HIDDEN_DIMS[-1],), jnp.float32)
    p["wout"] = xavier(keys[7], 1, HIDDEN_DIMS[-1])            # (1, 16)
    p["bout"] = jnp.zeros((1,), jnp.float32)
    return p


def fold_params(p):
    """Fold BN into the linear layers (bf16 MXU weights, f32 biases) and the
    skip path through the output layer. Produces the kernel's feature-major
    parameter set."""
    f = {}
    for i in (1, 2, 3):
        s = p[f"gamma{i}"] / jnp.sqrt(p[f"var{i}"] + BN_EPS)              # (dout,)
        t = p[f"beta{i}"] - p[f"mean{i}"] * s
        f[f"w{i}"] = (p[f"w{i}"] * s[:, None]).astype(jnp.bfloat16)       # bf16 MXU operand
        f[f"b{i}"] = (p[f"b{i}"] * s + t)[:, None].astype(jnp.float32)    # (dout, 1) f32
    wout = p["wout"]                                                      # (1, 16)
    f["wout"] = wout.reshape(-1, 1).astype(jnp.float32)                   # (16, 1)
    f["wsx"] = (wout @ p["wskip"]).reshape(-1, 1).astype(jnp.float32)     # (5, 1)
    f["c"] = (wout @ p["bskip"].reshape(-1, 1)
              + p["bout"].reshape(1, 1)).astype(jnp.float32)              # (1, 1)
    return f


# --------------------------------------------------------------------------
# Pure-JAX reference (unfolded f32, mirrors the PyTorch eval-mode forward)
# --------------------------------------------------------------------------
def reference_forward(x, p):
    ident = x
    h = x
    for i in (1, 2, 3):
        h = h @ p[f"w{i}"].T + p[f"b{i}"]
        s = p[f"gamma{i}"] / jnp.sqrt(p[f"var{i}"] + BN_EPS)
        h = (h - p[f"mean{i}"]) * s + p[f"beta{i}"]
        h = jnp.maximum(h, 0.0)                                   # ReLU; dropout = id
    h = h + (ident @ p["wskip"].T + p["bskip"])
    return h @ p["wout"].T + p["bout"]


if __name__ == "__main__":
    key = jax.random.PRNGKey(0)
    pkey, xkey, xkey2 = jax.random.split(key, 3)

    params = init_params(pkey)
    folded = fold_params(params)

    # bf16 MXU operands + bf16 input vs. the f32 reference -> ~1e-2-level
    # logit tolerance (per review).
    ATOL = RTOL = 3e-2

    # Small batch (single grid step, overhanging 128-lane tile).
    batch = 8
    x = jax.random.normal(xkey, (batch, INPUT_DIM), dtype=jnp.float32)
    out = jax.block_until_ready(nicu_readiness_forward(x, folded))
    ref = reference_forward(x, params)
    assert out.shape == (batch, 1)
    assert jnp.allclose(out, ref, atol=ATOL, rtol=RTOL)

    # Larger, non-multiple-of-tile batch: multi-step "parallel" grid with a
    # masked overhanging last tile (no host-side padding pass).
    batch2 = 300
    x2 = jax.random.normal(xkey2, (batch2, INPUT_DIM), dtype=jnp.float32)
    out2 = jax.block_until_ready(
        nicu_readiness_forward(x2, folded, block_batch=128))
    ref2 = reference_forward(x2, params)
    assert out2.shape == (batch2, 1)
    assert jnp.allclose(out2, ref2, atol=ATOL, rtol=RTOL)

    # Same batch through the feature-major (no-transpose) entry point with the
    # default (large) tile -> 2 grid steps of 256 lanes.
    out3 = jax.block_until_ready(nicu_readiness_forward_fm(x2.T, folded))
    assert out3.shape == (1, batch2)
    assert jnp.allclose(out3.T, ref2, atol=ATOL, rtol=RTOL)

    print("KERNEL_OK")
</pallas_src>

<mosaic_0001>
module attributes {stable_mosaic.version = 11 : i64} {
  func.func @_mlp_kernel(%arg0: i32, %arg1: memref<5x128xbf16, #tpu.memory_space<vmem>>, %arg2: memref<64x5xbf16, #tpu.memory_space<vmem>>, %arg3: memref<64x1xf32, #tpu.memory_space<vmem>>, %arg4: memref<32x64xbf16, #tpu.memory_space<vmem>>, %arg5: memref<32x1xf32, #tpu.memory_space<vmem>>, %arg6: memref<16x32xbf16, #tpu.memory_space<vmem>>, %arg7: memref<16x1xf32, #tpu.memory_space<vmem>>, %arg8: memref<16x1xf32, #tpu.memory_space<vmem>>, %arg9: memref<5x1xf32, #tpu.memory_space<vmem>>, %arg10: memref<1x1xf32, #tpu.memory_space<vmem>>, %arg11: memref<1x128xf32, #tpu.memory_space<vmem>>) attributes {dimension_semantics = [#tpu.dimension_semantics<parallel>], iteration_bounds = array<i64: 1>, scalar_prefetch = 0 : i64, scratch_operands = 0 : i64, tpu.core_type = #tpu.core_type<tc>, window_params = [{transform_indices = @transform_0, window_bounds = array<i64: 5, 128>}, {pipeline_mode = #tpu.pipeline_mode<synchronous>, transform_indices = @transform_1, window_bounds = array<i64: 64, 5>}, {pipeline_mode = #tpu.pipeline_mode<synchronous>, transform_indices = @transform_2, window_bounds = array<i64: 64, 1>}, {pipeline_mode = #tpu.pipeline_mode<synchronous>, transform_indices = @transform_3, window_bounds = array<i64: 32, 64>}, {pipeline_mode = #tpu.pipeline_mode<synchronous>, transform_indices = @transform_4, window_bounds = array<i64: 32, 1>}, {pipeline_mode = #tpu.pipeline_mode<synchronous>, transform_indices = @transform_5, window_bounds = array<i64: 16, 32>}, {pipeline_mode = #tpu.pipeline_mode<synchronous>, transform_indices = @transform_6, window_bounds = array<i64: 16, 1>}, {pipeline_mode = #tpu.pipeline_mode<synchronous>, transform_indices = @transform_7, window_bounds = array<i64: 16, 1>}, {pipeline_mode = #tpu.pipeline_mode<synchronous>, transform_indices = @transform_8, window_bounds = array<i64: 5, 1>}, {pipeline_mode = #tpu.pipeline_mode<synchronous>, transform_indices = @transform_9, window_bounds = array<i64: 1, 1>}, {transform_indices = @transform_10, window_bounds = array<i64: 1, 128>}]} {
    %c0 = arith.constant 0 : index
    %c0_0 = arith.constant 0 : index
    %0 = vector.load %arg1[%c0, %c0_0] : memref<5x128xbf16, #tpu.memory_space<vmem>>, vector<5x128xbf16>
    %c0_1 = arith.constant 0 : index
    %c0_2 = arith.constant 0 : index
    %1 = vector.load %arg2[%c0_1, %c0_2] : memref<64x5xbf16, #tpu.memory_space<vmem>>, vector<64x5xbf16>
    %cst = arith.constant dense<0.000000e+00> : vector<64x128xf32>
    %2 = tpu.matmul %1, %0, %cst {dimension_numbers = #tpu.dot_dimension_numbers<[1], [0], [0], [1], [0, 0, 1, 1], [], []>} : vector<64x5xbf16>, vector<5x128xbf16>, vector<64x128xf32> -> vector<64x128xf32>
    %c0_3 = arith.constant 0 : index
    %c0_4 = arith.constant 0 : index
    %3 = vector.load %arg3[%c0_3, %c0_4] : memref<64x1xf32, #tpu.memory_space<vmem>>, vector<64x1xf32>
    %4 = vector.broadcast %3 : vector<64x1xf32> to vector<64x128xf32>
    %5 = arith.addf %2, %4 : vector<64x128xf32>
    %cst_5 = arith.constant 0.000000e+00 : f32
    %6 = vector.broadcast %cst_5 : f32 to vector<64x128xf32>
    %7 = arith.maximumf %5, %6 : vector<64x128xf32>
    %c0_6 = arith.constant 0 : index
    %c0_7 = arith.constant 0 : index
    %8 = vector.load %arg4[%c0_6, %c0_7] : memref<32x64xbf16, #tpu.memory_space<vmem>>, vector<32x64xbf16>
    %9 = arith.truncf %7 : vector<64x128xf32> to vector<64x128xbf16>
    %cst_8 = arith.constant dense<0.000000e+00> : vector<32x128xf32>
    %10 = tpu.matmul %8, %9, %cst_8 {dimension_numbers = #tpu.dot_dimension_numbers<[1], [0], [0], [1], [0, 0, 1, 1], [], []>} : vector<32x64xbf16>, vector<64x128xbf16>, vector<32x128xf32> -> vector<32x128xf32>
    %c0_9 = arith.constant 0 : index
    %c0_10 = arith.constant 0 : index
    %11 = vector.load %arg5[%c0_9, %c0_10] : memref<32x1xf32, #tpu.memory_space<vmem>>, vector<32x1xf32>
    %12 = vector.broadcast %11 : vector<32x1xf32> to vector<32x128xf32>
    %13 = arith.addf %10, %12 : vector<32x128xf32>
    %cst_11 = arith.constant 0.000000e+00 : f32
    %14 = vector.broadcast %cst_11 : f32 to vector<32x128xf32>
    %15 = arith.maximumf %13, %14 : vector<32x128xf32>
    %c0_12 = arith.constant 0 : index
    %c0_13 = arith.constant 0 : index
    %16 = vector.load %arg6[%c0_12, %c0_13] : memref<16x32xbf16, #tpu.memory_space<vmem>>, vector<16x32xbf16>
    %17 = arith.truncf %15 : vector<32x128xf32> to vector<32x128xbf16>
    %cst_14 = arith.constant dense<0.000000e+00> : vector<16x128xf32>
    %18 = tpu.matmul %16, %17, %cst_14 {dimension_numbers = #tpu.dot_dimension_numbers<[1], [0], [0], [1], [0, 0, 1, 1], [], []>} : vector<16x32xbf16>, vector<32x128xbf16>, vector<16x128xf32> -> vector<16x128xf32>
    %c0_15 = arith.constant 0 : index
    %c0_16 = arith.constant 0 : index
    %19 = vector.load %arg7[%c0_15, %c0_16] : memref<16x1xf32, #tpu.memory_space<vmem>>, vector<16x1xf32>
    %20 = vector.broadcast %19 : vector<16x1xf32> to vector<16x128xf32>
    %21 = arith.addf %18, %20 : vector<16x128xf32>
    %cst_17 = arith.constant 0.000000e+00 : f32
    %22 = vector.broadcast %cst_17 : f32 to vector<16x128xf32>
    %23 = arith.maximumf %21, %22 : vector<16x128xf32>
    %c0_18 = arith.constant 0 : index
    %c0_19 = arith.constant 0 : index
    %24 = vector.load %arg8[%c0_18, %c0_19] : memref<16x1xf32, #tpu.memory_space<vmem>>, vector<16x1xf32>
    %25 = vector.broadcast %24 : vector<16x1xf32> to vector<16x128xf32>
    %26 = arith.mulf %23, %25 : vector<16x128xf32>
    %cst_20 = arith.constant dense<0.000000e+00> : vector<128xf32>
    %27 = vector.multi_reduction <add>, %26, %cst_20 [0] : vector<16x128xf32> to vector<128xf32>
    %28 = vector.shape_cast %27 : vector<128xf32> to vector<1x128xf32>
    %29 = arith.extf %0 : vector<5x128xbf16> to vector<5x128xf32>
    %c0_21 = arith.constant 0 : index
    %c0_22 = arith.constant 0 : index
    %30 = vector.load %arg9[%c0_21, %c0_22] : memref<5x1xf32, #tpu.memory_space<vmem>>, vector<5x1xf32>
    %31 = vector.broadcast %30 : vector<5x1xf32> to vector<5x128xf32>
    %32 = arith.mulf %29, %31 : vector<5x128xf32>
    %cst_23 = arith.constant dense<0.000000e+00> : vector<128xf32>
    %33 = vector.multi_reduction <add>, %32, %cst_23 [0] : vector<5x128xf32> to vector<128xf32>
    %34 = vector.shape_cast %33 : vector<128xf32> to vector<1x128xf32>
    %35 = arith.addf %28, %34 : vector<1x128xf32>
    %c0_24 = arith.constant 0 : index
    %c0_25 = arith.constant 0 : index
    %36 = vector.load %arg10[%c0_24, %c0_25] : memref<1x1xf32, #tpu.memory_space<vmem>>, vector<1x1xf32>
    %37 = vector.broadcast %36 : vector<1x1xf32> to vector<1x128xf32>
    %38 = arith.addf %35, %37 : vector<1x128xf32>
    %c0_26 = arith.constant 0 : index
    %c0_27 = arith.constant 0 : index
    %39 = vector.load %arg11[%c0_26, %c0_27] : memref<1x128xf32, #tpu.memory_space<vmem>>, vector<1x128xf32>
    tpu.vector_store %arg11[%c0_26, %c0_27], %38 {strides = array<i32>} : memref<1x128xf32, #tpu.memory_space<vmem>>, vector<1x128xf32>,
    return
  }
  func.func @transform_0(%arg0: i32) -> (i32, i32) {
    %c0_i32 = arith.constant 0 : i32
    %c0_i32_0 = arith.constant 0 : i32
    return %c0_i32, %arg0 : i32, i32
  }
  func.func @transform_1(%arg0: i32) -> (i32, i32) {
    %c0_i32 = arith.constant 0 : i32
    %c0_i32_0 = arith.constant 0 : i32
    %c0_i32_1 = arith.constant 0 : i32
    return %c0_i32, %c0_i32_0 : i32, i32
  }
  func.func @transform_2(%arg0: i32) -> (i32, i32) {
    %c0_i32 = arith.constant 0 : i32
    %c0_i32_0 = arith.constant 0 : i32
    %c0_i32_1 = arith.constant 0 : i32
    return %c0_i32, %c0_i32_0 : i32, i32
  }
  func.func @transform_3(%arg0: i32) -> (i32, i32) {
    %c0_i32 = arith.constant 0 : i32
    %c0_i32_0 = arith.constant 0 : i32
    %c0_i32_1 = arith.constant 0 : i32
    return %c0_i32, %c0_i32_0 : i32, i32
  }
  func.func @transform_4(%arg0: i32) -> (i32, i32) {
    %c0_i32 = arith.constant 0 : i32
    %c0_i32_0 = arith.constant 0 : i32
    %c0_i32_1 = arith.constant 0 : i32
    return %c0_i32, %c0_i32_0 : i32, i32
  }
  func.func @transform_5(%arg0: i32) -> (i32, i32) {
    %c0_i32 = arith.constant 0 : i32
    %c0_i32_0 = arith.constant 0 : i32
    %c0_i32_1 = arith.constant 0 : i32
    return %c0_i32, %c0_i32_0 : i32, i32
  }
  func.func @transform_6(%arg0: i32) -> (i32, i32) {
    %c0_i32 = arith.constant 0 : i32
    %c0_i32_0 = arith.constant 0 : i32
    %c0_i32_1 = arith.constant 0 : i32
    return %c0_i32, %c0_i32_0 : i32, i32
  }
  func.func @transform_7(%arg0: i32) -> (i32, i32) {
    %c0_i32 = arith.constant 0 : i32
    %c0_i32_0 = arith.constant 0 : i32
    %c0_i32_1 = arith.constant 0 : i32
    return %c0_i32, %c0_i32_0 : i32, i32
  }
  func.func @transform_8(%arg0: i32) -> (i32, i32) {
    %c0_i32 = arith.constant 0 : i32
    %c0_i32_0 = arith.constant 0 : i32
    %c0_i32_1 = arith.constant 0 : i32
    return %c0_i32, %c0_i32_0 : i32, i32
  }
  func.func @transform_9(%arg0: i32) -> (i32, i32) {
    %c0_i32 = arith.constant 0 : i32
    %c0_i32_0 = arith.constant 0 : i32
    %c0_i32_1 = arith.constant 0 : i32
    return %c0_i32, %c0_i32_0 : i32, i32
  }
  func.func @transform_10(%arg0: i32) -> (i32, i32) {
    %c0_i32 = arith.constant 0 : i32
    %c0_i32_0 = arith.constant 0 : i32
    return %c0_i32, %arg0 : i32, i32
  }
}

</mosaic_0001>

<bundles_post_ra>
// kernel: tpu_custom_call.1
= control target key start
LH: loop header
LB: loop body
LE: loop exit
PB: predicated region body
PF: predicated region fallthrough
CT: control target
= control target key end

     0   :  { %s699_s0 = inlined_call_operand.vmem [shape: bf16[5,8], index: 0, kind: input, shape index: {}]   ;;  %s700_s1 = inlined_call_operand.vmem [shape: bf16[64,5], index: 1, kind: input, shape index: {}]   ;;  %s701_s2 = inlined_call_operand.vmem [shape: f32[64,1], index: 2, kind: input, shape index: {}]   ;;  %s702_s3 = inlined_call_operand.vmem [shape: bf16[32,64], index: 3, kind: input, shape index: {}]   ;;  %s703_s4 = inlined_call_operand.vmem [shape: f32[32,1], index: 4, kind: input, shape index: {}]   ;;  %s704_s5 = inlined_call_operand.vmem [shape: bf16[16,32], index: 5, kind: input, shape index: {}]   ;;  %s705_s6 = inlined_call_operand.vmem [shape: f32[16,1], index: 6, kind: input, shape index: {}]   ;;  %s706_s7 = inlined_call_operand.vmem [shape: f32[16,1], index: 7, kind: input, shape index: {}]   ;;  %s707_s8 = inlined_call_operand.vmem [shape: f32[5,1], index: 8, kind: input, shape index: {}]   ;;  %s708_s9 = inlined_call_operand.<no memory space> [shape: f32[1,1], index: 9, kind: input, shape index: {}]   ;;  %s709_s10 = inlined_call_operand.hbm [shape: f32[1,8], index: 10, kind: output, shape index: {}]  }
   0x1   :  { %v15_v0 = vstv %s708_s9 }
   0x2   :  { %16 = vst [vmem:[#allocation2] sm:$0x1] %v15_v0 }
   0x3   :  { %v605_v1 = vld [vmem:[%s699_s0] sm:$0x7]  ;;  %vm129_vm0 = vcmask 1041408   ;;  %vm130_vm1 = vcmask 1042432   ;;  %v539_v3 = vmov 65535   ;;  %vm116_vm2 = vcmask 39936  }
   0x4   :  { %v508_v2 = vld [vmem:[%s700_s1] sm:$0xff]   ;;  %v131_v4 = vsel %vm129_vm0, 4294967295, %v539_v3  ;;  %v540_v7 = vmov 0   ;;  %v509_v8 = vld [vmem:[%s700_s1 + $0x8] sm:$0xff]   ;;  %v510_v10 = vld [vmem:[%s700_s1 + $0x10] sm:$0xff]  }
   0x5   :  { %v132_v5 = vsel %vm130_vm1, %v131_v4, 0  ;;  %473 = vmatprep.mubr.msk.bf16.mxu0 %vm116_vm2, %v508_v2  ;;  %506 = vset.pattern.permute.xlu0 %v540_v7  ;;  %v48_v9 = vld [vmem:[%s701_s2] sm:$0xff]  ;;  %v50_v11 = vld [vmem:[%s701_s2 + $0x10] sm:$0xff]  ;;  %v49_v12 = vld [vmem:[%s701_s2 + $0x8] sm:$0xff] }
   0x6   :  { %v134_v6 = vand.u32 %v132_v5, %v605_v1  ;;  %507 = vset.pattern.permute.xlu1 %v540_v7  ;;  %58 = vperm.xlu0 %506, %v48_v9   ;;  %v51_v13 = vld [vmem:[%s701_s2 + $0x18] sm:$0xff]  ;;  %v52_v14 = vld [vmem:[%s701_s2 + $0x20] sm:$0xff]  ;;  %v53_v15 = vld [vmem:[%s701_s2 + $0x28] sm:$0xff] }
   0x7   :  { %68 = vperm.xlu1 %507, %v50_v11   ;;  %v511_v16 = vld [vmem:[%s700_s1 + $0x18] sm:$0xff]  }
   0x8   :  { %471 = vmatprep.subr.bf16.mxu0 %v134_v6 }
   0x9   :  { %472 = vmatpush3.bf16.msra.mxu0 %v134_v6 }
   0xa   :  { %63 = vperm.xlu0 %506, %v49_v12  }
   0xb   :  { %73 = vperm.xlu1 %507, %v51_v13  }
   0xc   :  { %474 = vmatmul.mubr.msk.bf16.vlgmr.msra.gmra.mrb[0].mxu0 %vm116_vm2, %v509_v8 }
   0xd   :  { %477 = vmatprep.mubr.msk.bf16.mxu0 %vm116_vm2, %v510_v10 }
   0xe   :  { %17 = vsyncpa [#allocation4], 0  ;;  %78 = vperm.xlu0 %506, %v52_v14   ;;  %v54_v17 = vld [vmem:[%s701_s2 + $0x30] sm:$0xff]  ;;  %v55_v18 = vld [vmem:[%s701_s2 + $0x38] sm:$0xff]  ;;  %vm251_vm3 = vcmask 523264   ;;  %v541_v4 = vmov 0.0  }
   0xf   :  { %83 = vperm.xlu1 %507, %v53_v15   ;;  %v217_v19 = vld [vmem:[%s703_s4] sm:$0xff]  ;;  %v218_v20 = vld [vmem:[%s703_s4 + $0x8] sm:$0xff]  ;;  %v219_v21 = vld [vmem:[%s703_s4 + $0x10] sm:$0xff]  ;;  %493 = vmatprep.subr.bf16.mxu0 %v541_v4  ;;  %vm542_vm4 = vmmov 0   ;;  %vm332_vm5 = vcmask 261120   ;;  %vm408_vm6 = vcmask 1044480  }
  0x10   :  { %v220_v22 = vld [vmem:[%s703_s4 + $0x18] sm:$0xff]  ;;  %v315_v23 = vld [vmem:[%s705_s6] sm:$0xff]  ;;  %v316_v24 = vld [vmem:[%s705_s6 + $0x8] sm:$0xff] }
  0x11   :  { %v379_v25 = vld [vmem:[%s706_s7] sm:$0xff]  ;;  %v380_v26 = vld [vmem:[%s706_s7 + $0x8] sm:$0xff] }
  0x12   :  { %88 = vperm.xlu0 %506, %v54_v17   ;;  %v401_v27 = vld [vmem:[%s707_s8] sm:$0x1f]  ;;  %v513_v3 = vld [vmem:[%s702_s3 + $0x8] sm:$0xff]  }
  0x13   :  { %93 = vperm.xlu1 %507, %v55_v18   ;;  %v417_v28 = vld [vmem:[#allocation2] sm:$0x1] }
  0x14   :  { %478 = vmatmul.mubr.msk.bf16.gmra.mrb[4].mxu0 %vm116_vm2, %v511_v16  ;;  %v512_v29 = vld [vmem:[%s702_s3] sm:$0xff]  }
  0x15   :  { %489 = vmatprep.mubr.msk.bf16.mxu1 %vm251_vm3, %v512_v29  ;;  %497 = vmatprep.mubr.msk.bf16.mxu0 %vm542_vm4, %v541_v4 }
  0x16   :  { %223 = vperm.xlu0 %506, %v217_v19  }
  0x17   :  { %228 = vperm.xlu1 %507, %v218_v20  }
  0x1a   :  { %233 = vperm.xlu0 %506, %v219_v21  }
  0x1b   :  { %238 = vperm.xlu1 %507, %v220_v22  }
  0x1e   :  { %319 = vperm.xlu0 %506, %v315_v23   ;;  %v514_v23 = vld [vmem:[%s704_s5] sm:$0xff]   ;;  %s543_s5 = smov [#allocation3]  }
  0x1f   :  { %324 = vperm.xlu1 %507, %v316_v24   ;;  %s435_s14 = sshll.u32 %s543_s5, 4  ;;  %s436_s14 = int_to_ptr.vmem [resolvable:$true] %s435_s14 }
  0x20   :  { %s515_s15 = scalar_lea.vmem %s436_s14, 16  ;;  %s519_s16 = scalar_lea.vmem %s436_s14, 32 }
  0x21   :  { %p516_p0 = scmp.ne.s32.totalorder %s436_s14, %s515_s15  ;;  %p520_p1 = scmp.lt.s32.totalorder %s436_s14, %s436_s14 }
  0x22   :  { %383 = vperm.xlu0 %506, %v379_v25   ;;  %p521_p2 = scmp.lt.s32.totalorder %s519_s16, %s515_s15 }
  0x23   :  { %388 = vperm.xlu1 %507, %v380_v26   ;;  %v400_v26 = vunpack.c.l.bf16 %v605_v1 }
  0x24   :  { %p522_p3 = por %p521_p2, %p520_p1 }
  0x26   :  { %404 = vperm.xlu0 %506, %v401_v27   ;;  %p523_p4 = pnand %p522_p3, %p516_p0 }
  0x27   :  { %420 = vperm.xlu1 %507, %v417_v28  }
  0x85   :  { %v59_v30 = vpop.permute.xlu0 %58 }
  0x86   :  { %v69_v31 = vpop.permute.xlu1 %68 }
  0x89   :  { %v64_v32 = vpop.permute.xlu0 %63 }
  0x8a   :  { %v74_v33 = vpop.permute.xlu1 %73 }
  0x8d   :  { %v79_v37 = vpop.permute.xlu0 %78 }
  0x8e   :  { %v84_v42 = vpop.permute.xlu1 %83 }
  0x91   :  { %v89_v49 = vpop.permute.xlu0 %88 }
  0x92   :  { %v94_v54 = vpop.permute.xlu1 %93 }
  0x95   :  { %v224_v5 = vpop.permute.xlu0 %223 }
  0x96   :  { %v229_v6 = vpop.permute.xlu1 %228 }
  0x99   :  { %v234_v7 = vpop.permute.xlu0 %233 }
  0x9a   :  { %v239_v11 = vpop.permute.xlu1 %238 }
  0x9d   :  { %v320_v24 = vpop.permute.xlu0 %319 }
  0xa1   :  { %v384_v25 = vpop.permute.xlu0 %383 }
  0xa5   :  { %v405_v27 = vpop.permute.xlu0 %404 }
  0xa6   :  { %v407_v28 = vmul.f32 %v405_v27, %v400_v26 }
  0xa8   :  { %v409_v29 = vsel %vm408_vm6, %v407_v28, 0.0 }
  0xdf   :  { %v475_v34 = vpop.f32.mrb[0].mxu0 }
  0xe0   :  { %v179_v35 = vadd.f32 %v475_v34, %v69_v31  ;;  %v170_v36 = vpop.f32.mrb[1].mxu0 }
  0xe1   :  { %v171_v38 = vadd.f32 %v170_v36, %v59_v30  ;;  %v476_v39 = vpop.f32.mrb[2].mxu0  ;;  %v325_v30 = vpop.permute.xlu1 %324 }
  0xe2   :  { %v182_v40 = vadd.f32 %v476_v39, %v74_v33  ;;  %v173_v41 = vpop.f32.mrb[3].mxu0  ;;  %v203_v44 = vmax.f32 %v179_v35, 0.0 }
  0xe3   :  { %v174_v43 = vadd.f32 %v173_v41, %v64_v32  ;;  %v201_v46 = vmax.f32 %v171_v38, 0.0  ;;  %v410_v32 = vrot.slane %v409_v29, 4 }
  0xe4   :  { %v204_v45 = vmax.f32 %v182_v40, 0.0 }
  0xe5   :  { %v202_v47 = vmax.f32 %v174_v43, 0.0  ;;  %v411_v39 = vadd.f32 %v410_v32, %v409_v29  ;;  %v389_v41 = vpop.permute.xlu1 %388 }
  0xe6   :  { %v214_v48 = vpack.c.bf16 %v204_v45, %v203_v44  ;;  %v423_v45 = vlaneseq }
  0xe7   :  { %v479_v50 = vpop.f32.mrb[4].mxu0  ;;  %v213_v51 = vpack.c.bf16 %v202_v47, %v201_v46  ;;  %v412_v44 = vrot.slane %v411_v39, 2 }
  0xe8   :  { %v195_v52 = vadd.f32 %v479_v50, %v89_v49  ;;  %v186_v53 = vpop.f32.mrb[5].mxu0  ;;  %v424_v49 = vshrl.u32 %v423_v45, 7 }
  0xe9   :  { %v187_v55 = vadd.f32 %v186_v53, %v79_v37  ;;  %v480_v56 = vpop.f32.mrb[6].mxu0  ;;  %481 = vmatprep.subr.bf16.mxu1 %v213_v51  ;;  %v413_v47 = vadd.f32 %v412_v44, %v411_v39 }
  0xea   :  { %v198_v57 = vadd.f32 %v480_v56, %v94_v54  ;;  %v189_v58 = vpop.f32.mrb[7].mxu0  ;;  %482 = vmatpush3.bf16.msra.mxu1 %v213_v51  ;;  %v207_v60 = vmax.f32 %v195_v52, 0.0  ;;  %v425_v53 = vsub.s32 0, %v424_v49 }
  0xeb   :  { %v190_v59 = vadd.f32 %v189_v58, %v84_v42  ;;  %483 = vmatprep.subr.bf16.mxu1 %v214_v48  ;;  %v205_v62 = vmax.f32 %v187_v55, 0.0  ;;  %v414_v51 = vrot.slane %v413_v47, 1  ;;  %v421_v55 = vpop.permute.xlu1 %420 }
  0xec   :  { %v208_v61 = vmax.f32 %v198_v57, 0.0  ;;  %v426_v58 = vrot.slane %v421_v55, %v425_v53 }
  0xed   :  { %v206_v63 = vmax.f32 %v190_v59, 0.0  ;;  %v415_v57 = vadd.f32 %v414_v51, %v413_v47 }
  0xee   :  { %v216_v0 = vpack.c.bf16 %v208_v61, %v207_v60  ;;  %484 = vmatpush3.bf16.msra.mxu1 %v214_v48 }
  0xef   :  { %v215_v2 = vpack.c.bf16 %v206_v63, %v205_v62 }
  0xf1   :  { %485 = vmatprep.subr.bf16.mxu1 %v215_v2 }
  0xf2   :  { %486 = vmatpush3.bf16.msra.mxu1 %v215_v2 }
  0xf3   :  { %487 = vmatprep.subr.bf16.mxu1 %v216_v0 }
  0xf6   :  { %488 = vmatpush3.bf16.msra.mxu1 %v216_v0 }
  0xf9   :  { %490 = vmatmul.mubr.msk.bf16.vlgmr.msra.gmra.mrb[0].mxu1 %vm251_vm3, %v513_v3 }
 0x1cc   :  { %v491_v8 = vpop.f32.mrb[0].mxu1 }
 0x1cd   :  { %v301_v9 = vadd.f32 %v491_v8, %v234_v7  ;;  %v292_v10 = vpop.f32.mrb[1].mxu1 }
 0x1ce   :  { %v293_v12 = vadd.f32 %v292_v10, %v224_v5  ;;  %v492_v13 = vpop.f32.mrb[2].mxu1 }
 0x1cf   :  { %v304_v14 = vadd.f32 %v492_v13, %v239_v11  ;;  %v295_v15 = vpop.f32.mrb[3].mxu1  ;;  %v309_v17 = vmax.f32 %v301_v9, 0.0 }
 0x1d0   :  { %v296_v16 = vadd.f32 %v295_v15, %v229_v6  ;;  %v307_v19 = vmax.f32 %v293_v12, 0.0 }
 0x1d1   :  { %v310_v18 = vmax.f32 %v304_v14, 0.0 }
 0x1d2   :  { %v308_v20 = vmax.f32 %v296_v16, 0.0 }
 0x1d3   :  { %v314_v21 = vpack.c.bf16 %v310_v18, %v309_v17 }
 0x1d4   :  { %v313_v22 = vpack.c.bf16 %v308_v20, %v307_v19 }
 0x1d6   :  { %494 = vmatpush3.bf16.msra.mxu0 %v313_v22 }
 0x1d7   :  { %495 = vmatprep.subr.bf16.mxu0 %v541_v4 }
 0x1da   :  { %496 = vmatpush3.bf16.msra.mxu0 %v314_v21 }
 0x1dd   :  { %498 = vmatmul.mubr.msk.bf16.vlgmr.msra.gmra.mrb[8].mxu0 %vm332_vm5, %v514_v23 }
 0x2b0   :  { %v370_v31 = vpop.f32.mrb[8].mxu0 }
 0x2b1   :  { %v371_v33 = vadd.f32 %v370_v31, %v320_v24  ;;  %v499_v34 = vpop.f32.mrb[9].mxu0 }
 0x2b2   :  { %v373_v35 = vpop.f32.mrb[10].mxu0 }
 0x2b3   :  { %v377_v36 = vmax.f32 %v371_v33, 0.0  ;;  %v374_v37 = vadd.f32 %v373_v35, %v325_v30  ;;  %v500_v38 = vpop.f32.mrb[11].mxu0 }
 0x2b5   :  { %v378_v40 = vmax.f32 %v374_v37, 0.0  ;;  %v391_v42 = vmul.f32 %v384_v25, %v377_v36 }
 0x2b7   :  { %v392_v43 = vmul.f32 %v389_v41, %v378_v40 }
 0x2b9   :  { %v393_v1 = vadd.f32 %v392_v43, %v391_v42 }
 0x2bb   :  { %v394_v46 = vrot.slane %v393_v1, 4 }
 0x2bd   :  { %v395_v48 = vadd.f32 %v394_v46, %v393_v1 }
 0x2bf   :  { %v396_v50 = vrot.slane %v395_v48, 2 }
 0x2c1   :  { %v397_v52 = vadd.f32 %v396_v50, %v395_v48 }
 0x2c3   :  { %v398_v54 = vrot.slane %v397_v52, 1 }
 0x2c5   :  { %v399_v56 = vadd.f32 %v398_v54, %v397_v52 }
 0x2c7   :  { %v416_v59 = vadd.f32 %v415_v57, %v399_v56 }
 0x2c9   :  { %v427_v60 = vadd.f32 %v426_v58, %v416_v59 }
 0x2cb   :  { %428 = vst [vmem:[#allocation3] sm:$0x1] %v427_v60 }
 0x2cc   :  { %526 = shalt.err (!%p523_p4)
}
 0x2cd   :  { %s527_s0 = scalar_lea.hbm %s709_s10, 16 }
 0x2ce   :  { %p528_p5 = scmp.ne.s32.totalorder %s709_s10, %s527_s0  ;;  %p531_p6 = scmp.lt.u32.totalorder %s527_s0, %s709_s10 }
 0x2d0   :  { %p533_p7 = pnand %p531_p6, %p528_p5 }
 0x2d2   :  { %536 = shalt.err (!%p533_p7)
}
 0x2d3   :  { %438 = dma.vmem_to_hbm [thread:$0]  %s436_s14, 16, %s709_s10, [#allocation4]  }
 0x2d4   :  { %537 = dma.done.wait [#allocation4], 16  }
 0x2d5   :  { %538 = vsyncadd [#allocation4], 4294967280 }
 0x2d6   :  { %442 = vsyncpa [#allocation4], 1 }

</bundles_post_ra>
